<compile_context>
chip_gen: v6e
topology: v6e:2x2x1
jax: 0.10.0
libtpu: 0.0.40
codegen_flags: <defaults>
</compile_context>

<pallas_src>
import math
import functools

import jax
import jax.numpy as jnp
from jax.experimental import pallas as pl
from jax.experimental.pallas import tpu as pltpu


_DEFAULT_WEIGHT_DTYPE = jnp.bfloat16
# Split the fused weight stream across grid steps only when one column tile
# would exceed this many bytes (otherwise the ~0.35 us/step overhead loses).
_WEIGHT_TILE_SPLIT_BYTES = 4 * 1024 * 1024
_DEFAULT_SCOPED_VMEM = 32 * 1024 * 1024


def _random_layer_kernel(*refs, k_sizes, scale):
    """n matmuls + scaled elementwise product, fully fused.

    refs = (x_0, ..., x_{n-1}, w, out)
      x_i : [B, K_i]        f32 full block (lane-aligned, no in-kernel slicing)
      w   : [K_total, TN]   weight column tile; rows are the n matrices stacked
      out : [B, TN]         f32
    """
    n = len(k_sizes)
    x_refs = refs[:n]
    w_ref = refs[n]
    out_ref = refs[n + 1]

    off = 0
    acc = None
    for idx, k in enumerate(k_sizes):
        term = jnp.dot(
            x_refs[idx][...],
            w_ref[off:off + k, :],     # static, tile-aligned sublane slice
            preferred_element_type=jnp.float32,
        )
        if idx == 0:
            # Fold the 1 / output_dim**(1/n) normalization into the first term.
            acc = term * scale
        else:
            acc = acc * term
        off += k
    out_ref[...] = acc.astype(out_ref.dtype)


def _pick_tn(k_total, output_dim, weight_itemsize):
    """Single grid step unless a weight column tile exceeds the byte budget;
    then halve while keeping the tile lane-dense (>= 512, multiple of 256)."""
    tn = output_dim
    while (k_total * tn * weight_itemsize > _WEIGHT_TILE_SPLIT_BYTES
           and tn % 256 == 0 and tn // 2 >= 512):
        tn //= 2
    return tn


def init_random_layer_params(key, input_dim_list, output_dim,
                             weight_dtype=_DEFAULT_WEIGHT_DTYPE):
    """Mirror of RandomLayer.__init__: draw the fixed random matrices and
    build the fused weight stream ONCE (concat + dtype cast happen here, not
    per forward call)."""
    n = len(input_dim_list)
    keys = jax.random.split(key, n)
    random_matrix = [
        jax.random.normal(keys[i], (input_dim_list[i], output_dim),
                          dtype=jnp.float32)
        for i in range(n)
    ]
    w_cat = (random_matrix[0] if n == 1
             else jnp.concatenate(random_matrix, axis=0))
    w_cat = w_cat.astype(weight_dtype)
    return {
        "w_cat": w_cat,                       # [sum(K_i), output_dim], bf16
        "k_sizes": tuple(int(k) for k in input_dim_list),
        "output_dim": int(output_dim),
        "random_matrix": random_matrix,       # f32 originals (reference only)
    }


def random_layer_forward(input_list, params, tn=None):
    """Pallas implementation of RandomLayer.forward.

    input_list[i]: [B, K_i] float32
    returns:       [B, output_dim] float32
    """
    w_cat = params["w_cat"]
    k_sizes = params["k_sizes"]
    output_dim = params["output_dim"]

    n = len(input_list)
    assert n == len(k_sizes) and n >= 1
    B = input_list[0].shape[0]
    for x, k in zip(input_list, k_sizes):
        assert x.shape == (B, k)
        # Guard against unaligned in-kernel weight-row slices (perf cliff).
        assert k % 8 == 0, "K_i must be a multiple of 8 (pad at init if not)"
        if w_cat.dtype == jnp.bfloat16:
            assert k % 16 == 0, "K_i must be a multiple of 16 for bf16 weights"

    k_total = sum(k_sizes)
    assert w_cat.shape == (k_total, output_dim)
    w_itemsize = jnp.dtype(w_cat.dtype).itemsize
    scale = 1.0 / math.pow(float(output_dim), 1.0 / n)

    if tn is None:
        tn = _pick_tn(k_total, output_dim, w_itemsize)
    assert output_dim % tn == 0
    assert tn % 128 == 0, "keep the output tile lane-dense (multiple of 128)"
    grid_steps = output_dim // tn

    kernel = functools.partial(
        _random_layer_kernel, k_sizes=k_sizes, scale=scale)

    # Rough VMEM need: double-buffered weight tile + activations + output.
    vmem_needed = (2 * k_total * tn * w_itemsize
                   + 2 * sum(B * k * 4 for k in k_sizes)
                   + 2 * B * tn * 4
                   + (1 << 20))
    vmem_limit = vmem_needed if vmem_needed > _DEFAULT_SCOPED_VMEM else None

    cost = pl.CostEstimate(
        flops=2 * B * k_total * output_dim,
        transcendentals=0,
        bytes_accessed=(w_itemsize * k_total * output_dim
                        + 4 * B * k_total + 4 * B * output_dim),
    )

    in_specs = [
        # Each activation is its own full block, resident across the N axis.
        pl.BlockSpec((B, k), lambda j: (0, 0)) for k in k_sizes
    ] + [
        # Column tile of the fused (init-time) weight stream.
        pl.BlockSpec((k_total, tn), lambda j: (0, j)),
    ]

    return pl.pallas_call(
        kernel,
        out_shape=jax.ShapeDtypeStruct((B, output_dim), jnp.float32),
        grid_spec=pltpu.PrefetchScalarGridSpec(
            num_scalar_prefetch=0,
            grid=(grid_steps,),
            in_specs=in_specs,
            out_specs=pl.BlockSpec((B, tn), lambda j: (0, j)),
        ),
        compiler_params=pltpu.CompilerParams(
            dimension_semantics=(
                "arbitrary" if grid_steps == 1 else "parallel",),
            vmem_limit_bytes=vmem_limit,
        ),
        cost_estimate=cost,
    )(*input_list, w_cat)


def random_layer_reference(input_list, params):
    """Plain-JAX reference mirroring the PyTorch forward, using the same
    bf16-quantized weights the kernel streams (upcast to f32)."""
    output_dim = params["output_dim"]
    w_q = [w.astype(params["w_cat"].dtype).astype(jnp.float32)
           for w in params["random_matrix"]]
    outs = [x @ w for x, w in zip(input_list, w_q)]
    res = outs[0] / math.pow(float(output_dim), 1.0 / len(outs))
    for o in outs[1:]:
        res = res * o
    return res


if __name__ == "__main__":
    # Typical CDAN-style usage: two inputs (features, class probabilities).
    # NOTE: real deployments should batch so B >= 128 to keep the MXU busy;
    # this is only a small correctness/run check.
    B = 8
    input_dim_list = [32, 16]
    output_dim = 1024

    key = jax.random.PRNGKey(0)
    param_key, in_key = jax.random.split(key)

    params = init_random_layer_params(param_key, input_dim_list, output_dim)

    in_keys = jax.random.split(in_key, len(input_dim_list))
    inputs = [
        jax.random.normal(in_keys[i], (B, input_dim_list[i]), dtype=jnp.float32)
        for i in range(len(input_dim_list))
    ]

    out = random_layer_forward(inputs, params)
    out = jax.block_until_ready(out)

    ref = random_layer_reference(inputs, params)
    assert out.shape == (B, output_dim)
    # bf16 weight streaming -> loosened tolerance vs. the f32-accum reference.
    assert jnp.allclose(out, ref, rtol=1e-2, atol=1e-2), "mismatch vs reference"

    print("KERNEL_OK")
</pallas_src>

<mosaic_0001>
module attributes {stable_mosaic.version = 11 : i64} {
  func.func @_random_layer_kernel(%arg0: i32, %arg1: memref<8x32xf32, #tpu.memory_space<vmem>>, %arg2: memref<8x16xf32, #tpu.memory_space<vmem>>, %arg3: memref<48x1024xbf16, #tpu.memory_space<vmem>>, %arg4: memref<8x1024xf32, #tpu.memory_space<vmem>>) attributes {dimension_semantics = [#tpu.dimension_semantics<arbitrary>], iteration_bounds = array<i64: 1>, scalar_prefetch = 0 : i64, scratch_operands = 0 : i64, tpu.core_type = #tpu.core_type<tc>, window_params = [{pipeline_mode = #tpu.pipeline_mode<synchronous>, transform_indices = @transform_0, window_bounds = array<i64: 8, 32>}, {pipeline_mode = #tpu.pipeline_mode<synchronous>, transform_indices = @transform_1, window_bounds = array<i64: 8, 16>}, {transform_indices = @transform_2, window_bounds = array<i64: 48, 1024>}, {transform_indices = @transform_3, window_bounds = array<i64: 8, 1024>}]} {
    %c0 = arith.constant 0 : index
    %c0_0 = arith.constant 0 : index
    %0 = vector.load %arg1[%c0, %c0_0] : memref<8x32xf32, #tpu.memory_space<vmem>>, vector<8x32xf32>
    %c0_1 = arith.constant 0 : index
    %c0_2 = arith.constant 0 : index
    %1 = vector.load %arg3[%c0_1, %c0_2] : memref<48x1024xbf16, #tpu.memory_space<vmem>>, vector<32x1024xbf16>
    %cst = arith.constant dense<0.000000e+00> : vector<8x1024xf32>
    %2 = tpu.matmul %0, %1, %cst {dimension_numbers = #tpu.dot_dimension_numbers<[1], [0], [0], [1], [0, 0, 1, 1], [], []>} : vector<8x32xf32>, vector<32x1024xbf16>, vector<8x1024xf32> -> vector<8x1024xf32>
    %cst_3 = arith.constant 3.125000e-02 : f32
    %3 = vector.broadcast %cst_3 : f32 to vector<8x1024xf32>
    %4 = arith.mulf %2, %3 : vector<8x1024xf32>
    %c0_4 = arith.constant 0 : index
    %c0_5 = arith.constant 0 : index
    %5 = vector.load %arg2[%c0_4, %c0_5] : memref<8x16xf32, #tpu.memory_space<vmem>>, vector<8x16xf32>
    %c32 = arith.constant 32 : index
    %c0_6 = arith.constant 0 : index
    %6 = vector.load %arg3[%c32, %c0_6] : memref<48x1024xbf16, #tpu.memory_space<vmem>>, vector<16x1024xbf16>
    %cst_7 = arith.constant dense<0.000000e+00> : vector<8x1024xf32>
    %7 = tpu.matmul %5, %6, %cst_7 {dimension_numbers = #tpu.dot_dimension_numbers<[1], [0], [0], [1], [0, 0, 1, 1], [], []>} : vector<8x16xf32>, vector<16x1024xbf16>, vector<8x1024xf32> -> vector<8x1024xf32>
    %8 = arith.mulf %4, %7 : vector<8x1024xf32>
    %c0_8 = arith.constant 0 : index
    %c0_9 = arith.constant 0 : index
    %9 = vector.load %arg4[%c0_8, %c0_9] : memref<8x1024xf32, #tpu.memory_space<vmem>>, vector<8x1024xf32>
    tpu.vector_store %arg4[%c0_8, %c0_9], %8 {strides = array<i32>} : memref<8x1024xf32, #tpu.memory_space<vmem>>, vector<8x1024xf32>,
    return
  }
  func.func @transform_0(%arg0: i32) -> (i32, i32) {
    %c0_i32 = arith.constant 0 : i32
    %c0_i32_0 = arith.constant 0 : i32
    %c0_i32_1 = arith.constant 0 : i32
    return %c0_i32, %c0_i32_0 : i32, i32
  }
  func.func @transform_1(%arg0: i32) -> (i32, i32) {
    %c0_i32 = arith.constant 0 : i32
    %c0_i32_0 = arith.constant 0 : i32
    %c0_i32_1 = arith.constant 0 : i32
    return %c0_i32, %c0_i32_0 : i32, i32
  }
  func.func @transform_2(%arg0: i32) -> (i32, i32) {
    %c0_i32 = arith.constant 0 : i32
    %c0_i32_0 = arith.constant 0 : i32
    return %c0_i32, %arg0 : i32, i32
  }
  func.func @transform_3(%arg0: i32) -> (i32, i32) {
    %c0_i32 = arith.constant 0 : i32
    %c0_i32_0 = arith.constant 0 : i32
    return %c0_i32, %arg0 : i32, i32
  }
}

</mosaic_0001>

<bundles_post_ra>
// kernel: tpu_custom_call.1
= control target key start
LH: loop header
LB: loop body
LE: loop exit
PB: predicated region body
PF: predicated region fallthrough
CT: control target
= control target key end

     0   :  { %8 = vsyncpa [#allocation3], 0  ;;  %s735_s0 = inlined_call_operand.hbm [shape: f32[8,32], index: 0, kind: input, shape index: {}]   ;;  %s736_s1 = inlined_call_operand.hbm [shape: f32[8,16], index: 1, kind: input, shape index: {}]   ;;  %s737_s2 = inlined_call_operand.hbm [shape: bf16[48,1024], index: 2, kind: input, shape index: {}]   ;;  %s738_s3 = inlined_call_operand.hbm [shape: f32[8,1024], index: 3, kind: output, shape index: {}]  }
   0x1   :  { %9 = vsyncpa [#allocation6], 0 }
   0x2   :  { %10 = vsyncpa [#allocation4], 0  ;;  %s684_s12 = smov [#allocation5]   ;;  %s685_s14 = smov [#allocation2]  }
   0x3   :  { %s27_s13 = sshll.u32 %s684_s12, 4  ;;  %s17_s15 = sshll.u32 %s685_s14, 4  ;;  %s28_s13 = int_to_ptr.vmem [resolvable:$true] %s27_s13  ;;  %s18_s15 = int_to_ptr.vmem [resolvable:$true] %s17_s15 }
   0x4   :  { %s606_s16 = scalar_lea.vmem %s28_s13, 128  ;;  %p611_p1 = scmp.lt.s32.totalorder %s28_s13, %s28_s13 }
   0x5   :  { %p607_p0 = scmp.ne.s32.totalorder %s28_s13, %s606_s16  ;;  %p612_p2 = scmp.lt.s32.totalorder %s606_s16, %s606_s16 }
   0x7   :  { %p613_p3 = por %p612_p2, %p611_p1 }
   0x9   :  { %p614_p4 = pnand %p613_p3, %p607_p0 }
   0xb   :  { %617 = shalt.err (!%p614_p4)
}
   0xc   :  { %30 = dma.hbm_to_vmem [thread:$0]  %s736_s1, 128, %s28_s13, [#allocation6]  }
   0xd   :  { %s626_s19 = scalar_lea.vmem %s18_s15, 128  ;;  %p631_p6 = scmp.lt.s32.totalorder %s18_s15, %s18_s15 }
   0xe   :  { %p627_p5 = scmp.ne.s32.totalorder %s18_s15, %s626_s19  ;;  %p632_p7 = scmp.lt.s32.totalorder %s626_s19, %s626_s19 }
  0x10   :  { %p633_p8 = por %p632_p7, %p631_p6 }
  0x12   :  { %p634_p9 = pnand %p633_p8, %p627_p5 }
  0x14   :  { %637 = shalt.err (!%p634_p9)
}
  0x15   :  { %20 = dma.hbm_to_vmem [thread:$0]  %s735_s0, 128, %s18_s15, [#allocation3]  }
  0x16   :  { %s686_s22 = smov [#allocation7]  }
  0x17   :  { %s36_s23 = sshll.u32 %s686_s22, 4  ;;  %s37_s23 = int_to_ptr.vmem [resolvable:$true] %s36_s23 }
  0x18   :  { %s646_s24 = scalar_lea.vmem %s37_s23, 3072  ;;  %p651_p11 = scmp.lt.s32.totalorder %s37_s23, %s37_s23 }
  0x19   :  { %p647_p10 = scmp.ne.s32.totalorder %s37_s23, %s646_s24  ;;  %p652_p12 = scmp.lt.s32.totalorder %s646_s24, %s646_s24 }
  0x1b   :  { %p653_p13 = por %p652_p12, %p651_p11 }
  0x1d   :  { %p654_p0 = pnand %p653_p13, %p647_p10 }
  0x1f   :  { %657 = shalt.err (!%p654_p0)
}
  0x20   :  { %s687_s1 = smov 512   ;;  %s688_s25 = smov 32  }
  0x21   :  { %42 = dma.hbm_to_vmem [thread:$0]  %s737_s2, 3072, %s37_s23, [#allocation6], %s687_s1, %s687_s1, %s688_s25  }
  0x22   :  { %678 = dma.done.wait [#allocation3], 128  }
  0x23   :  { %679 = vsyncadd [#allocation3], 4294967168 }
  0x24   :  { %680 = dma.done.wait [#allocation6], 3200  }
  0x25   :  { %681 = vsyncadd [#allocation6], 4294964096  ;;  %v689_v0 = vmov 0.0   ;;  %v62_v1 = vld [vmem:[#allocation7 + $0x40] sm:$0xff]  ;;  %v63_v3 = vld [vmem:[#allocation7 + $0x48] sm:$0xff]  ;;  %vm150_vm0 = vcmask 261120  }
  0x26   :  { %186 = vmatprep.mubr.f32.mxu0 %v689_v0  ;;  %225 = vmatprep.mubr.f32.mxu1 %v689_v0  ;;  %v66_v2 = vld [vmem:[#allocation7 + $0x60] sm:$0xff]  ;;  %v67_v5 = vld [vmem:[#allocation7 + $0x68] sm:$0xff]  ;;  %v64_v15 = vld [vmem:[#allocation7 + $0x50] sm:$0xff]  ;;  %vm367_vm1 = vcmask 130048   ;;  %s690_s0 = smov [#allocation8]  }
  0x27   :  { %v568_v4 = vcombine.high %v62_v1, %v66_v2  ;;  %v567_v6 = vcombine.low %v62_v1, %v66_v2  ;;  %v54_v7 = vld [vmem:[#allocation7] sm:$0xff]  ;;  %v570_v9 = vcombine.high %v63_v3, %v67_v5  ;;  %v569_v10 = vcombine.low %v63_v3, %v67_v5  ;;  %v55_v12 = vld [vmem:[#allocation7 + $0x8] sm:$0xff]  ;;  %v68_v16 = vld [vmem:[#allocation7 + $0x70] sm:$0xff]  ;;  %s549_s2 = sshll.u32 %s690_s0, 4  ;;  %s550_s2 = int_to_ptr.vmem [resolvable:$true] %s549_s2 }
  0x28   :  { %v58_v8 = vld [vmem:[#allocation7 + $0x20] sm:$0xff]  ;;  %v59_v13 = vld [vmem:[#allocation7 + $0x28] sm:$0xff]  ;;  %v65_v17 = vld [vmem:[#allocation7 + $0x58] sm:$0xff]  ;;  %v572_v21 = vcombine.high %v64_v15, %v68_v16  ;;  %v571_v28 = vcombine.low %v64_v15, %v68_v16  ;;  %s658_s28 = scalar_lea.vmem %s550_s2, 1024  ;;  %p663_p2 = scmp.lt.s32.totalorder %s550_s2, %s550_s2 }
  0x29   :  { %v560_v11 = vcombine.high %v54_v7, %v58_v8  ;;  %166 = vmatprep.subr.bf16.mxu0 %v568_v4  ;;  %v562_v14 = vcombine.high %v55_v12, %v59_v13  ;;  %205 = vmatprep.subr.bf16.mxu1 %v570_v9  ;;  %v559_v18 = vcombine.low %v54_v7, %v58_v8  ;;  %v69_v19 = vld [vmem:[#allocation7 + $0x78] sm:$0xff]  ;;  %v56_v23 = vld [vmem:[#allocation7 + $0x10] sm:$0xff]  ;;  %v319_v32 = vld [vmem:[#allocation7 + $0x80] sm:$0xff]  ;;  %p659_p1 = scmp.ne.s32.totalorder %s550_s2, %s658_s28  ;;  %p664_p3 = scmp.lt.s32.totalorder %s658_s28, %s658_s28 }
  0x2a   :  { %167 = vmatpush1.bf16.msra.mxu0 %v567_v6  ;;  %206 = vmatpush1.bf16.msra.mxu1 %v569_v10  ;;  %v561_v20 = vcombine.low %v55_v12, %v59_v13  ;;  %v574_v22 = vcombine.high %v65_v17, %v69_v19  ;;  %v60_v24 = vld [vmem:[#allocation7 + $0x30] sm:$0xff]  ;;  %v57_v25 = vld [vmem:[#allocation7 + $0x18] sm:$0xff]  ;;  %v573_v29 = vcombine.low %v65_v17, %v69_v19  ;;  %v323_v33 = vld [vmem:[#allocation7 + $0xa0] sm:$0xff] }
  0x2b   :  { %168 = vmatprep.subr.bf16.mxu0 %v560_v11  ;;  %207 = vmatprep.subr.bf16.mxu1 %v562_v14  ;;  %v61_v26 = vld [vmem:[#allocation7 + $0x38] sm:$0xff]  ;;  %v53_v27 = vld [vmem:[#allocation2] sm:$0xff]  ;;  %v564_v30 = vcombine.high %v56_v23, %v60_v24  ;;  %v320_v34 = vld [vmem:[#allocation7 + $0x88] sm:$0xff]  ;;  %v563_v36 = vcombine.low %v56_v23, %v60_v24  ;;  %v580_v38 = vcombine.high %v319_v32, %v323_v33  ;;  %p665_p4 = por %p664_p3, %p663_p2 }
  0x2c   :  { %v566_v31 = vcombine.high %v57_v25, %v61_v26  ;;  %v324_v35 = vld [vmem:[#allocation7 + $0xa8] sm:$0xff]  ;;  %v565_v37 = vcombine.low %v57_v25, %v61_v26  ;;  %v321_v40 = vld [vmem:[#allocation7 + $0x90] sm:$0xff]  ;;  %v579_v42 = vcombine.low %v319_v32, %v323_v33  ;;  %v322_v43 = vld [vmem:[#allocation7 + $0x98] sm:$0xff] }
  0x2d   :  { %v582_v39 = vcombine.high %v320_v34, %v324_v35  ;;  %v325_v41 = vld [vmem:[#allocation7 + $0xb0] sm:$0xff]  ;;  %v326_v44 = vld [vmem:[#allocation7 + $0xb8] sm:$0xff]  ;;  %v581_v45 = vcombine.low %v320_v34, %v324_v35  ;;  %p666_p5 = pnand %p665_p4, %p659_p1 }
  0x2e   :  { %169 = vmatpush1.bf16.msra.mxu0 %v559_v18  ;;  %208 = vmatpush1.bf16.msra.mxu1 %v561_v20  ;;  %v584_v46 = vcombine.high %v321_v40, %v325_v41  ;;  %v586_v47 = vcombine.high %v322_v43, %v326_v44  ;;  %v318_v48 = vld [vmem:[#allocation5] sm:$0xff]  ;;  %v583_v49 = vcombine.low %v321_v40, %v325_v41 }
  0x2f   :  { %244 = vmatprep.subr.bf16.mxu0 %v572_v21  ;;  %283 = vmatprep.subr.bf16.mxu1 %v574_v22  ;;  %v585_v50 = vcombine.low %v322_v43, %v326_v44 }
  0x31   :  { %575 = vmatmul.mubr.msk.f32.vlgmr.msra.gmra.mxu0 %vm150_vm0, %v53_v27  ;;  %576 = vmatmul.mubr.msk.f32.vlgmr.msra.gmra.mxu1 %vm150_vm0, %v53_v27 }
  0x32   :  { %245 = vmatpush1.bf16.msra.mxu0 %v571_v28  ;;  %284 = vmatpush1.bf16.msra.mxu1 %v573_v29 }
  0x33   :  { %246 = vmatprep.subr.bf16.mxu0 %v564_v30  ;;  %285 = vmatprep.subr.bf16.mxu1 %v566_v31 }
  0x34   :  { %264 = vmatprep.mubr.f32.mxu0 %v689_v0  ;;  %303 = vmatprep.mubr.f32.mxu1 %v689_v0 }
  0x36   :  { %247 = vmatpush1.bf16.msra.mxu0 %v563_v36  ;;  %286 = vmatpush1.bf16.msra.mxu1 %v565_v37 }
  0x37   :  { %385 = vmatprep.subr.bf16.mxu0 %v580_v38  ;;  %424 = vmatprep.subr.bf16.mxu1 %v582_v39 }
  0x39   :  { %577 = vmatmul.mubr.msk.f32.vlgmr.msra.gmra.mxu0 %vm150_vm0, %v53_v27  ;;  %578 = vmatmul.mubr.msk.f32.vlgmr.msra.gmra.mxu1 %vm150_vm0, %v53_v27 }
  0x3a   :  { %386 = vmatpush1.bf16.msra.mxu0 %v579_v42  ;;  %425 = vmatpush1.bf16.msra.mxu1 %v581_v45 }
  0x3b   :  { %403 = vmatprep.mubr.f32.mxu0 %v689_v0  ;;  %442 = vmatprep.mubr.f32.mxu1 %v689_v0 }
  0x3c   :  { %463 = vmatprep.subr.bf16.mxu0 %v584_v46  ;;  %502 = vmatprep.subr.bf16.mxu1 %v586_v47 }
  0x3d   :  { %587 = vmatmul.mubr.msk.f32.vlgmr.msra.gmra.mxu0 %vm367_vm1, %v318_v48  ;;  %588 = vmatmul.mubr.msk.f32.vlgmr.msra.gmra.mxu1 %vm367_vm1, %v318_v48 }
  0x3e   :  { %464 = vmatpush1.bf16.msra.mxu0 %v583_v49  ;;  %503 = vmatpush1.bf16.msra.mxu1 %v585_v50 }
  0x3f   :  { %481 = vmatprep.mubr.f32.mxu0 %v689_v0  ;;  %520 = vmatprep.mubr.f32.mxu1 %v689_v0 }
  0x41   :  { %589 = vmatmul.mubr.msk.f32.vlgmr.msra.gmra.mxu0 %vm367_vm1, %v318_v48  ;;  %590 = vmatmul.mubr.msk.f32.vlgmr.msra.gmra.mxu1 %vm367_vm1, %v318_v48 }
  0xf1   :  { %v188_v51 = vpop.f32.mrf.mxu0  ;;  %v227_v52 = vpop.f32.mrf.mxu1 }
  0xf2   :  { %v310_v58 = vmul.f32 0.03125, %v188_v51  ;;  %v312_v60 = vmul.f32 0.03125, %v227_v52 }
  0xf3   :  { %v190_v53 = vpop.f32.mrf.mxu0  ;;  %v229_v54 = vpop.f32.mrf.mxu1 }
  0xf4   :  { %v311_v62 = vmul.f32 0.03125, %v190_v53  ;;  %v313_v2 = vmul.f32 0.03125, %v229_v54 }
  0xf9   :  { %v266_v55 = vpop.f32.mrf.mxu0  ;;  %v305_v56 = vpop.f32.mrf.mxu1 }
  0xfa   :  { %v314_v0 = vmul.f32 0.03125, %v266_v55  ;;  %v316_v7 = vmul.f32 0.03125, %v305_v56 }
  0xfb   :  { %v268_v57 = vpop.f32.mrf.mxu0  ;;  %v307_v59 = vpop.f32.mrf.mxu1 }
  0xfc   :  { %v315_v10 = vmul.f32 0.03125, %v268_v57  ;;  %v317_v13 = vmul.f32 0.03125, %v307_v59 }
  0xfd   :  { %v405_v61 = vpop.f32.mrf.mxu0  ;;  %v444_v1 = vpop.f32.mrf.mxu1 }
  0xfe   :  { %v527_v63 = vmul.f32 %v405_v61, %v310_v58  ;;  %v529_v3 = vmul.f32 %v444_v1, %v312_v60 }
  0xff   :  { %v407_v4 = vpop.f32.mrf.mxu0  ;;  %v446_v6 = vpop.f32.mrf.mxu1 }
 0x100   :  { %535 = vst [vmem:[#allocation8] sm:$0xff] %v527_v63  ;;  %v528_v5 = vmul.f32 %v407_v4, %v311_v62  ;;  %537 = vst [vmem:[#allocation8 + $0x10] sm:$0xff] %v529_v3  ;;  %v530_v8 = vmul.f32 %v446_v6, %v313_v2 }
 0x101   :  { %v483_v9 = vpop.f32.mrf.mxu0  ;;  %v522_v12 = vpop.f32.mrf.mxu1 }
 0x102   :  { %536 = vst [vmem:[#allocation8 + $0x8] sm:$0xff] %v528_v5  ;;  %v531_v11 = vmul.f32 %v483_v9, %v314_v0  ;;  %538 = vst [vmem:[#allocation8 + $0x18] sm:$0xff] %v530_v8  ;;  %v533_v14 = vmul.f32 %v522_v12, %v316_v7 }
 0x103   :  { %v485_v15 = vpop.f32.mrf.mxu0  ;;  %v524_v17 = vpop.f32.mrf.mxu1 }
 0x104   :  { %539 = vst [vmem:[#allocation8 + $0x20] sm:$0xff] %v531_v11  ;;  %v532_v16 = vmul.f32 %v485_v15, %v315_v10  ;;  %541 = vst [vmem:[#allocation8 + $0x30] sm:$0xff] %v533_v14  ;;  %v534_v18 = vmul.f32 %v524_v17, %v317_v13 }
 0x106   :  { %540 = vst [vmem:[#allocation8 + $0x28] sm:$0xff] %v532_v16  ;;  %542 = vst [vmem:[#allocation8 + $0x38] sm:$0xff] %v534_v18 }
 0x107   :  { %669 = shalt.err (!%p666_p5)
}
 0x108   :  { %552 = dma.vmem_to_hbm [thread:$0]  %s550_s2, 1024, %s738_s3, [#allocation4]  }
 0x109   :  { %682 = dma.done.wait [#allocation4], 1024  }
 0x10a   :  { %683 = vsyncadd [#allocation4], 4294966272 }
 0x10b   :  { %556 = vsyncpa [#allocation3], 1 }
 0x10c   :  { %557 = vsyncpa [#allocation6], 1 }
 0x10d   :  { %558 = vsyncpa [#allocation4], 1 }

</bundles_post_ra>
